<compile_context>
chip_gen: v5e
topology: v5e:2x2
jax: 0.10.0
libtpu: 0.0.40
codegen_flags: <defaults>
</compile_context>

<pallas_src>
import jax
import jax.numpy as jnp
from jax.experimental import pallas as pl
from jax.experimental.pallas import tpu as pltpu

# ---- architecture constants ----
IN_DIM = 16        # head input features
HEAD_OUT = 16      # head out_features
H1 = 128 * 2       # linear1 out (expanded) = 256
H2 = 256 * 2       # linear2 out (expanded) = 512
N_ACTIONS = 2      # linear3_final out
OUT_PAD = 128      # lane-dense padded final output width


def _round_up(x, m):
    return ((x + m - 1) // m) * m


def dqn_kernel(x_ref, w1_ref, b1_ref, w2_ref, b2_ref, w3_ref, b3_ref, o_ref):
    """One batch tile of the fused DQN MLP. Weights are grid-resident bf16, biases f32."""
    x = x_ref[...].astype(jnp.bfloat16)

    # fused head+linear1: Linear(16 -> 256) + ReLU   (bf16 MXU, f32 accumulation)
    h1 = jnp.dot(x, w1_ref[...], preferred_element_type=jnp.float32) + b1_ref[...]
    h1 = jnp.maximum(h1, 0.0).astype(jnp.bfloat16)

    # linear2: Linear(256 -> 512) + ReLU
    h2 = jnp.dot(h1, w2_ref[...], preferred_element_type=jnp.float32) + b2_ref[...]
    h2 = jnp.maximum(h2, 0.0).astype(jnp.bfloat16)

    # linear3_final: Linear(512 -> 128 padded)  (only first N_ACTIONS columns are real)
    q = jnp.dot(h2, w3_ref[...], preferred_element_type=jnp.float32) + b3_ref[...]
    o_ref[...] = q.astype(o_ref.dtype)


def prepare_params(params):
    """Fold head into linear1, cast weights to bf16, lane-pad the final layer."""
    head_w = params["head_w"].astype(jnp.float32)
    head_b = params["head_b"].astype(jnp.float32)
    w1 = params["w1"].astype(jnp.float32)
    b1 = params["b1"].astype(jnp.float32)

    w1f = (head_w @ w1).astype(jnp.bfloat16)                 # [16, 256]
    b1f = head_b @ w1 + b1                                   # [1, 256] f32

    w2 = params["w2"].astype(jnp.bfloat16)                   # [256, 512]
    b2 = params["b2"].astype(jnp.float32)                    # [1, 512]

    w3 = jnp.zeros((H2, OUT_PAD), jnp.bfloat16)
    w3 = w3.at[:, :N_ACTIONS].set(params["w3"].astype(jnp.bfloat16))   # [512, 128]
    b3 = jnp.zeros((1, OUT_PAD), jnp.float32)
    b3 = b3.at[:, :N_ACTIONS].set(params["b3"].astype(jnp.float32))    # [1, 128]
    return w1f, b1f, w2, b2, w3, b3


def dqn_forward(x, params, *, tb=256):
    """x: [B, IN_DIM] float32 -> [B, N_ACTIONS] float32."""
    B = x.shape[0]
    w1f, b1f, w2, b2, w3, b3 = prepare_params(params)

    # Batch tiling: tile rows are a multiple of 8; pad the batch to an exact grid.
    if B <= tb:
        TB = _round_up(max(B, 8), 8)
        B_pad = TB
    else:
        TB = tb
        B_pad = _round_up(B, TB)
    xp = x if B_pad == B else jnp.pad(x, ((0, B_pad - B), (0, 0)))

    grid = (B_pad // TB,)
    const_map = lambda i: (0, 0)   # weights/biases: same block every step -> stay resident

    flops = 2 * B_pad * (IN_DIM * H1 + H1 * H2 + H2 * OUT_PAD)
    bytes_accessed = (
        2 * (w1f.size + w2.size + w3.size)        # bf16 weights
        + 4 * (b1f.size + b2.size + b3.size)      # f32 biases
        + 4 * B_pad * (IN_DIM + OUT_PAD)          # f32 activations in/out
    )

    out = pl.pallas_call(
        dqn_kernel,
        out_shape=jax.ShapeDtypeStruct((B_pad, OUT_PAD), jnp.float32),
        grid=grid,
        in_specs=[
            pl.BlockSpec((TB, IN_DIM), lambda i: (i, 0)),
            pl.BlockSpec((IN_DIM, H1), const_map),
            pl.BlockSpec((1, H1), const_map),
            pl.BlockSpec((H1, H2), const_map),
            pl.BlockSpec((1, H2), const_map),
            pl.BlockSpec((H2, OUT_PAD), const_map),
            pl.BlockSpec((1, OUT_PAD), const_map),
        ],
        out_specs=pl.BlockSpec((TB, OUT_PAD), lambda i: (i, 0)),
        compiler_params=pltpu.CompilerParams(dimension_semantics=("parallel",)),
        cost_estimate=pl.CostEstimate(
            flops=flops, transcendentals=0, bytes_accessed=bytes_accessed),
    )(xp, w1f, b1f, w2, b2, w3, b3)

    return out[:B, :N_ACTIONS]


def init_params(key):
    """Deterministic synthetic parameters (PyTorch-Linear-shaped, stored [in, out], f32)."""
    ks = jax.random.split(key, 8)

    def lin(kw, kb, fan_in, fan_out):
        bound = 1.0 / jnp.sqrt(fan_in)
        w = jax.random.uniform(kw, (fan_in, fan_out), jnp.float32, -bound, bound)
        b = jax.random.uniform(kb, (1, fan_out), jnp.float32, -bound, bound)
        return w, b

    head_w, head_b = lin(ks[0], ks[1], IN_DIM, HEAD_OUT)
    w1, b1 = lin(ks[2], ks[3], HEAD_OUT, H1)
    w2, b2 = lin(ks[4], ks[5], H1, H2)
    w3, b3 = lin(ks[6], ks[7], H2, N_ACTIONS)
    return {"head_w": head_w, "head_b": head_b,
            "w1": w1, "b1": b1,
            "w2": w2, "b2": b2,
            "w3": w3, "b3": b3}


def dqn_forward_ref_f32(x, p):
    """Pure f32, unfused reference (PyTorch-equivalent math)."""
    h = x @ p["head_w"] + p["head_b"]
    h1 = jnp.maximum(h @ p["w1"] + p["b1"], 0.0)
    h2 = jnp.maximum(h1 @ p["w2"] + p["b2"], 0.0)
    return h2 @ p["w3"] + p["b3"]


def dqn_forward_ref_fused_bf16(x, params):
    """Reference using the exact fused/bf16 params the kernel consumes (f32 accumulation)."""
    w1f, b1f, w2, b2, w3, b3 = prepare_params(params)
    xb = x.astype(jnp.bfloat16)
    h1 = jnp.maximum(jnp.dot(xb, w1f, preferred_element_type=jnp.float32) + b1f, 0.0)
    h1 = h1.astype(jnp.bfloat16)
    h2 = jnp.maximum(jnp.dot(h1, w2, preferred_element_type=jnp.float32) + b2, 0.0)
    h2 = h2.astype(jnp.bfloat16)
    q = jnp.dot(h2, w3, preferred_element_type=jnp.float32) + b3
    return q[:, :N_ACTIONS]


if __name__ == "__main__":
    key = jax.random.PRNGKey(0)
    kp, kx = jax.random.split(key)
    params = init_params(kp)

    # Small shape consistent with the module: batch=8, in_dim=16.
    B = 8
    x = jax.random.normal(kx, (B, IN_DIM), jnp.float32)

    out = dqn_forward(x, params)
    out = jax.block_until_ready(out)
    assert out.shape == (B, N_ACTIONS)

    # Exact-path reference (same fused bf16 params, f32 accumulation).
    ref_bf16 = dqn_forward_ref_fused_bf16(x, params)
    assert jnp.allclose(out, ref_bf16, atol=2e-3, rtol=2e-3), "mismatch vs fused-bf16 reference"

    # Sanity check vs pure-f32 PyTorch-equivalent math (loose: bf16 + fusion reassociation).
    ref_f32 = dqn_forward_ref_f32(x, params)
    assert jnp.allclose(out, ref_f32, atol=1e-1, rtol=1e-1), "mismatch vs f32 reference"

    # Exercise the multi-step batch grid path (padding + tiling) once as well.
    B2 = 300
    x2 = jax.random.normal(jax.random.PRNGKey(1), (B2, IN_DIM), jnp.float32)
    out2 = jax.block_until_ready(dqn_forward(x2, params, tb=128))
    ref2 = dqn_forward_ref_fused_bf16(x2, params)
    assert out2.shape == (B2, N_ACTIONS)
    assert jnp.allclose(out2, ref2, atol=2e-3, rtol=2e-3), "mismatch on tiled batch"

    print("KERNEL_OK")
</pallas_src>

<mosaic_0001>
module attributes {stable_mosaic.version = 11 : i64} {
  func.func @dqn_kernel(%arg0: i32, %arg1: memref<8x16xf32, #tpu.memory_space<vmem>>, %arg2: memref<16x256xbf16, #tpu.memory_space<vmem>>, %arg3: memref<1x256xf32, #tpu.memory_space<vmem>>, %arg4: memref<256x512xbf16, #tpu.memory_space<vmem>>, %arg5: memref<1x512xf32, #tpu.memory_space<vmem>>, %arg6: memref<512x128xbf16, #tpu.memory_space<vmem>>, %arg7: memref<1x128xf32, #tpu.memory_space<vmem>>, %arg8: memref<8x128xf32, #tpu.memory_space<vmem>>) attributes {dimension_semantics = [#tpu.dimension_semantics<parallel>], iteration_bounds = array<i64: 1>, scalar_prefetch = 0 : i64, scratch_operands = 0 : i64, tpu.core_type = #tpu.core_type<tc>, window_params = [{transform_indices = @transform_0, window_bounds = array<i64: 8, 16>}, {pipeline_mode = #tpu.pipeline_mode<synchronous>, transform_indices = @transform_1, window_bounds = array<i64: 16, 256>}, {pipeline_mode = #tpu.pipeline_mode<synchronous>, transform_indices = @transform_2, window_bounds = array<i64: 1, 256>}, {pipeline_mode = #tpu.pipeline_mode<synchronous>, transform_indices = @transform_3, window_bounds = array<i64: 256, 512>}, {pipeline_mode = #tpu.pipeline_mode<synchronous>, transform_indices = @transform_4, window_bounds = array<i64: 1, 512>}, {pipeline_mode = #tpu.pipeline_mode<synchronous>, transform_indices = @transform_5, window_bounds = array<i64: 512, 128>}, {pipeline_mode = #tpu.pipeline_mode<synchronous>, transform_indices = @transform_6, window_bounds = array<i64: 1, 128>}, {transform_indices = @transform_7, window_bounds = array<i64: 8, 128>}]} {
    %c0 = arith.constant 0 : index
    %c0_0 = arith.constant 0 : index
    %0 = vector.load %arg1[%c0, %c0_0] : memref<8x16xf32, #tpu.memory_space<vmem>>, vector<8x16xf32>
    %1 = arith.truncf %0 : vector<8x16xf32> to vector<8x16xbf16>
    %c0_1 = arith.constant 0 : index
    %c0_2 = arith.constant 0 : index
    %2 = vector.load %arg2[%c0_1, %c0_2] : memref<16x256xbf16, #tpu.memory_space<vmem>>, vector<16x256xbf16>
    %cst = arith.constant dense<0.000000e+00> : vector<8x256xf32>
    %3 = tpu.matmul %1, %2, %cst {dimension_numbers = #tpu.dot_dimension_numbers<[1], [0], [0], [1], [0, 0, 1, 1], [], []>} : vector<8x16xbf16>, vector<16x256xbf16>, vector<8x256xf32> -> vector<8x256xf32>
    %c0_3 = arith.constant 0 : index
    %c0_4 = arith.constant 0 : index
    %4 = vector.load %arg3[%c0_3, %c0_4] : memref<1x256xf32, #tpu.memory_space<vmem>>, vector<1x256xf32>
    %5 = vector.broadcast %4 : vector<1x256xf32> to vector<8x256xf32>
    %6 = arith.addf %3, %5 : vector<8x256xf32>
    %cst_5 = arith.constant 0.000000e+00 : f32
    %7 = vector.broadcast %cst_5 : f32 to vector<8x256xf32>
    %8 = arith.maximumf %6, %7 : vector<8x256xf32>
    %9 = arith.truncf %8 : vector<8x256xf32> to vector<8x256xbf16>
    %c0_6 = arith.constant 0 : index
    %c0_7 = arith.constant 0 : index
    %10 = vector.load %arg4[%c0_6, %c0_7] : memref<256x512xbf16, #tpu.memory_space<vmem>>, vector<256x512xbf16>
    %cst_8 = arith.constant dense<0.000000e+00> : vector<8x512xf32>
    %11 = tpu.matmul %9, %10, %cst_8 {dimension_numbers = #tpu.dot_dimension_numbers<[1], [0], [0], [1], [0, 0, 1, 1], [], []>} : vector<8x256xbf16>, vector<256x512xbf16>, vector<8x512xf32> -> vector<8x512xf32>
    %c0_9 = arith.constant 0 : index
    %c0_10 = arith.constant 0 : index
    %12 = vector.load %arg5[%c0_9, %c0_10] : memref<1x512xf32, #tpu.memory_space<vmem>>, vector<1x512xf32>
    %13 = vector.broadcast %12 : vector<1x512xf32> to vector<8x512xf32>
    %14 = arith.addf %11, %13 : vector<8x512xf32>
    %cst_11 = arith.constant 0.000000e+00 : f32
    %15 = vector.broadcast %cst_11 : f32 to vector<8x512xf32>
    %16 = arith.maximumf %14, %15 : vector<8x512xf32>
    %17 = arith.truncf %16 : vector<8x512xf32> to vector<8x512xbf16>
    %c0_12 = arith.constant 0 : index
    %c0_13 = arith.constant 0 : index
    %18 = vector.load %arg6[%c0_12, %c0_13] : memref<512x128xbf16, #tpu.memory_space<vmem>>, vector<512x128xbf16>
    %cst_14 = arith.constant dense<0.000000e+00> : vector<8x128xf32>
    %19 = tpu.matmul %17, %18, %cst_14 {dimension_numbers = #tpu.dot_dimension_numbers<[1], [0], [0], [1], [0, 0, 1, 1], [], []>} : vector<8x512xbf16>, vector<512x128xbf16>, vector<8x128xf32> -> vector<8x128xf32>
    %c0_15 = arith.constant 0 : index
    %c0_16 = arith.constant 0 : index
    %20 = vector.load %arg7[%c0_15, %c0_16] : memref<1x128xf32, #tpu.memory_space<vmem>>, vector<1x128xf32>
    %21 = vector.broadcast %20 : vector<1x128xf32> to vector<8x128xf32>
    %22 = arith.addf %19, %21 : vector<8x128xf32>
    %c0_17 = arith.constant 0 : index
    %c0_18 = arith.constant 0 : index
    %23 = vector.load %arg8[%c0_17, %c0_18] : memref<8x128xf32, #tpu.memory_space<vmem>>, vector<8x128xf32>
    tpu.vector_store %arg8[%c0_17, %c0_18], %22 {strides = array<i32>} : memref<8x128xf32, #tpu.memory_space<vmem>>, vector<8x128xf32>,
    return
  }
  func.func @transform_0(%arg0: i32) -> (i32, i32) {
    %c0_i32 = arith.constant 0 : i32
    %c0_i32_0 = arith.constant 0 : i32
    return %arg0, %c0_i32 : i32, i32
  }
  func.func @transform_1(%arg0: i32) -> (i32, i32) {
    %c0_i32 = arith.constant 0 : i32
    %c0_i32_0 = arith.constant 0 : i32
    %c0_i32_1 = arith.constant 0 : i32
    return %c0_i32, %c0_i32_0 : i32, i32
  }
  func.func @transform_2(%arg0: i32) -> (i32, i32) {
    %c0_i32 = arith.constant 0 : i32
    %c0_i32_0 = arith.constant 0 : i32
    %c0_i32_1 = arith.constant 0 : i32
    return %c0_i32, %c0_i32_0 : i32, i32
  }
  func.func @transform_3(%arg0: i32) -> (i32, i32) {
    %c0_i32 = arith.constant 0 : i32
    %c0_i32_0 = arith.constant 0 : i32
    %c0_i32_1 = arith.constant 0 : i32
    return %c0_i32, %c0_i32_0 : i32, i32
  }
  func.func @transform_4(%arg0: i32) -> (i32, i32) {
    %c0_i32 = arith.constant 0 : i32
    %c0_i32_0 = arith.constant 0 : i32
    %c0_i32_1 = arith.constant 0 : i32
    return %c0_i32, %c0_i32_0 : i32, i32
  }
  func.func @transform_5(%arg0: i32) -> (i32, i32) {
    %c0_i32 = arith.constant 0 : i32
    %c0_i32_0 = arith.constant 0 : i32
    %c0_i32_1 = arith.constant 0 : i32
    return %c0_i32, %c0_i32_0 : i32, i32
  }
  func.func @transform_6(%arg0: i32) -> (i32, i32) {
    %c0_i32 = arith.constant 0 : i32
    %c0_i32_0 = arith.constant 0 : i32
    %c0_i32_1 = arith.constant 0 : i32
    return %c0_i32, %c0_i32_0 : i32, i32
  }
  func.func @transform_7(%arg0: i32) -> (i32, i32) {
    %c0_i32 = arith.constant 0 : i32
    %c0_i32_0 = arith.constant 0 : i32
    return %arg0, %c0_i32 : i32, i32
  }
}

</mosaic_0001>

<bundles_post_ra>
// kernel: tpu_custom_call.1
= control target key start
LH: loop header
LB: loop body
LE: loop exit
PB: predicated region body
PF: predicated region fallthrough
CT: control target
= control target key end

     0   :  { %12 = vsyncpa [#allocation3], 0  ;;  %s1772_s0 = inlined_call_operand.hbm [shape: f32[8,16], index: 0, kind: input, shape index: {}]   ;;  %s1773_s1 = inlined_call_operand.hbm [shape: bf16[16,256], index: 1, kind: input, shape index: {}]   ;;  %s1774_s2 = inlined_call_operand.hbm [shape: f32[1,256], index: 2, kind: input, shape index: {}]   ;;  %s1775_s3 = inlined_call_operand.hbm [shape: bf16[256,512], index: 3, kind: input, shape index: {}]   ;;  %s1776_s4 = inlined_call_operand.hbm [shape: f32[1,512], index: 4, kind: input, shape index: {}]   ;;  %s1777_s5 = inlined_call_operand.hbm [shape: bf16[512,128], index: 5, kind: input, shape index: {}]   ;;  %s1778_s6 = inlined_call_operand.vmem [shape: f32[1,128], index: 6, kind: input, shape index: {}]   ;;  %s1779_s7 = inlined_call_operand.hbm [shape: f32[8,128], index: 7, kind: output, shape index: {}]  }
   0x1   :  { %13 = vsyncpa [#allocation6], 0 }
   0x2   :  { %14 = vsyncpa [#allocation9], 0 }
   0x3   :  { %15 = vsyncpa [#allocation12], 0  ;;  %s32_s26 = sshll.u32 %s1773_s1, 4  ;;  %s33_s26 = int_to_ptr.hbm [resolvable:$true] %s32_s26 }
   0x4   :  { %16 = vsyncpa [#allocation4], 0  ;;  %s1693_s27 = smov [#allocation5]   ;;  %s56_s8 = sshll.u32 %s1775_s3, 4  ;;  %s57_s8 = int_to_ptr.hbm [resolvable:$true] %s56_s8 }
   0x5   :  { %s34_s28 = sshll.u32 %s1693_s27, 4  ;;  %s1694_s9 = smov 128   ;;  %s35_s28 = int_to_ptr.vmem [resolvable:$true] %s34_s28 }
   0x6   :  { %s1695_s10 = smov 8   ;;  %s1696_s11 = smov [#allocation8]  }
   0x7   :  { %40 = dma.hbm_to_vmem [thread:$0]  %s33_s26, 256, %s35_s28, [#allocation6], %s1694_s9, %s1694_s9, %s1695_s10  }
   0x8   :  { %s58_s12 = sshll.u32 %s1696_s11, 4  ;;  %s1697_s13 = smov 256   ;;  %s59_s12 = int_to_ptr.vmem [resolvable:$true] %s58_s12 }
   0x9   :  { %s1698_s14 = smov 16   ;;  %s22_s16 = sshll.u32 %s1772_s0, 4  ;;  %s23_s16 = int_to_ptr.hbm [resolvable:$true] %s22_s16 }
   0xa   :  { %64 = dma.hbm_to_vmem [thread:$0]  %s57_s8, 8192, %s59_s12, [#allocation9], %s1697_s13, %s1697_s13, %s1698_s14  }
   0xb   :  { %s1699_s17 = smov [#allocation2]   ;;  %s46_s20 = sshll.u32 %s1774_s2, 4  ;;  %s47_s20 = int_to_ptr.hbm [resolvable:$true] %s46_s20 }
   0xc   :  { %s24_s18 = sshll.u32 %s1699_s17, 4  ;;  %s1700_s21 = smov [#allocation7]   ;;  %s25_s18 = int_to_ptr.vmem [resolvable:$true] %s24_s18 }
   0xd   :  { %27 = dma.hbm_to_vmem [thread:$0]  %s23_s16, 128, %s25_s18, [#allocation3]  }
   0xe   :  { %s48_s22 = sshll.u32 %s1700_s21, 4  ;;  %s70_s25 = sshll.u32 %s1776_s4, 4  ;;  %s49_s22 = int_to_ptr.vmem [resolvable:$true] %s48_s22  ;;  %s71_s25 = int_to_ptr.hbm [resolvable:$true] %s70_s25 }
   0xf   :  { %51 = dma.hbm_to_vmem [thread:$0]  %s47_s20, 32, %s49_s22, [#allocation6]  }
  0x10   :  { %s80_s27 = sshll.u32 %s1777_s5, 4  ;;  %s1701_s28 = smov [#allocation10]   ;;  %s81_s27 = int_to_ptr.hbm [resolvable:$true] %s80_s27 }
  0x11   :  { %s72_s29 = sshll.u32 %s1701_s28, 4  ;;  %s1702_s2 = smov [#allocation11]   ;;  %s73_s29 = int_to_ptr.vmem [resolvable:$true] %s72_s29 }
  0x12   :  { %75 = dma.hbm_to_vmem [thread:$0]  %s71_s25, 64, %s73_s29, [#allocation9]  }
  0x13   :  { %s82_s30 = sshll.u32 %s1702_s2, 4  ;;  %s1703_s8 = smov 64   ;;  %s83_s30 = int_to_ptr.vmem [resolvable:$true] %s82_s30 }
  0x14   :  { %s1704_s9 = smov 4  }
  0x15   :  { %88 = dma.hbm_to_vmem [thread:$0]  %s81_s27, 4096, %s83_s30, [#allocation12], %s1703_s8, %s1703_s8, %s1704_s9  }
  0x16   :  { %1683 = dma.done.wait [#allocation3], 128  }
  0x17   :  { %1684 = vsyncadd [#allocation3], 4294967168 }
  0x18   :  { %1685 = dma.done.wait [#allocation6], 288  }
  0x19   :  { %1686 = vsyncadd [#allocation6], 4294967008 }
  0x1a   :  { %1687 = dma.done.wait [#allocation9], 8256  }
  0x1b   :  { %1688 = vsyncadd [#allocation9], 4294959040 }
  0x1c   :  { %1689 = dma.done.wait [#allocation12], 4096  }
  0x1d   :  { %1690 = vsyncadd [#allocation12], 4294963200  ;;  %v1011_v0 = vld [vmem:[#allocation5] sm:$0xf]  ;;  %v1404_v1 = vld [vmem:[#allocation5 + $0x4] sm:$0xf0] }
  0x1e   :  { %v1403_v2 = vld [vmem:[#allocation5 + $0x4] sm:$0xf]  ;;  %v1012_v3 = vor.u32 %v1404_v1, %v1011_v0  ;;  %v1013_v4 = vld [vmem:[#allocation5 + $0x8] sm:$0xf0]  ;;  %v116_v5 = vld [vmem:[#allocation2] sm:$0xff]  ;;  %vm136_vm0 = vcmask 130048  }
  0x1f   :  { %v1133_v6 = vld [vmem:[#allocation8 + $0xe0] sm:$0xf]  ;;  %v1016_v7 = vor.u32 %v1403_v2, %v1013_v4  ;;  %v117_v8 = vpack.c.bf16 %v116_v5, %v116_v5  ;;  %v1435_v9 = vld [vmem:[#allocation8 + $0xec] sm:$0xf0]  ;;  %v1433_v14 = vld [vmem:[#allocation8 + $0xe4] sm:$0xf] }
  0x20   :  { %v1261_v10 = vld [vmem:[#allocation8 + $0x1e0] sm:$0xf]  ;;  %v1467_v11 = vld [vmem:[#allocation8 + $0x1ec] sm:$0xf0]  ;;  %147 = vmatpush.bf16.msra.mxu0 %v1012_v3  ;;  %v1134_v12 = vor.u32 %v1435_v9, %v1133_v6  ;;  %v1135_v15 = vld [vmem:[#allocation8 + $0xf0] sm:$0xf0] }
  0x21   :  { %v1262_v13 = vor.u32 %v1467_v11, %v1261_v10  ;;  %v1465_v16 = vld [vmem:[#allocation8 + $0x1e4] sm:$0xf]  ;;  %160 = vmatpush.bf16.msra.mxu1 %v1016_v7  ;;  %v1138_v17 = vor.u32 %v1433_v14, %v1135_v15  ;;  %v1263_v18 = vld [vmem:[#allocation8 + $0x1f0] sm:$0xf0]  ;;  %v1117_v19 = vld [vmem:[#allocation8 + $0xc0] sm:$0xf] }
  0x22   :  { %v1431_v20 = vld [vmem:[#allocation8 + $0xcc] sm:$0xf0]  ;;  %564 = vmatpush.bf16.msra.mxu2 %v1134_v12  ;;  %v1266_v21 = vor.u32 %v1465_v16, %v1263_v18  ;;  %v1245_v23 = vld [vmem:[#allocation8 + $0x1c0] sm:$0xf]  ;;  %v1429_v25 = vld [vmem:[#allocation8 + $0xc4] sm:$0xf] }
  0x23   :  { %577 = vmatpush.bf16.msra.mxu3 %v1262_v13  ;;  %v1118_v22 = vor.u32 %v1431_v20, %v1117_v19  ;;  %v1463_v24 = vld [vmem:[#allocation8 + $0x1cc] sm:$0xf0]  ;;  %1017 = vmatmul.msk.bf16.vlgmr.msra.gmra.mxu0 %vm136_vm0, %v117_v8  ;;  %v1119_v27 = vld [vmem:[#allocation8 + $0xd0] sm:$0xf0]  ;;  %v1461_v28 = vld [vmem:[#allocation8 + $0x1c4] sm:$0xf] }
  0x24   :  { %v1246_v26 = vor.u32 %v1463_v24, %v1245_v23  ;;  %v1247_v29 = vld [vmem:[#allocation8 + $0x1d0] sm:$0xf0]  ;;  %1018 = vmatmul.msk.bf16.vlgmr.msra.gmra.mxu1 %vm136_vm0, %v117_v8  ;;  %590 = vmatpush.bf16.msrb.mxu0 %v1138_v17  ;;  %v1122_v30 = vor.u32 %v1429_v25, %v1119_v27  ;;  %v1101_v31 = vld [vmem:[#allocation8 + $0xa0] sm:$0xf]  ;;  %v1427_v32 = vld [vmem:[#allocation8 + $0xac] sm:$0xf0] }
  0x25   :  { %v1229_v33 = vld [vmem:[#allocation8 + $0x1a0] sm:$0xf]  ;;  %603 = vmatpush.bf16.msrb.mxu1 %v1266_v21  ;;  %v1250_v34 = vor.u32 %v1461_v28, %v1247_v29  ;;  %v1459_v35 = vld [vmem:[#allocation8 + $0x1ac] sm:$0xf0]  ;;  %v1425_v36 = vld [vmem:[#allocation8 + $0xa4] sm:$0xf]  ;;  %v1102_v38 = vor.u32 %v1427_v32, %v1101_v31 }
  0x26   :  { %v1103_v37 = vld [vmem:[#allocation8 + $0xb0] sm:$0xf0]  ;;  %565 = vmatpush.bf16.msra.mxu2 %v1118_v22  ;;  %v1230_v39 = vor.u32 %v1459_v35, %v1229_v33  ;;  %v1457_v40 = vld [vmem:[#allocation8 + $0x1a4] sm:$0xf]  ;;  %v1085_v42 = vld [vmem:[#allocation8 + $0x80] sm:$0xf] }
  0x27   :  { %578 = vmatpush.bf16.msra.mxu3 %v1246_v26  ;;  %v1231_v41 = vld [vmem:[#allocation8 + $0x1b0] sm:$0xf0]  ;;  %v1423_v43 = vld [vmem:[#allocation8 + $0x8c] sm:$0xf0]  ;;  %v1213_v44 = vld [vmem:[#allocation8 + $0x180] sm:$0xf]  ;;  %v1106_v46 = vor.u32 %v1425_v36, %v1103_v37 }
  0x28   :  { %v1455_v45 = vld [vmem:[#allocation8 + $0x18c] sm:$0xf0]  ;;  %591 = vmatpush.bf16.msrb.mxu0 %v1122_v30  ;;  %v1234_v47 = vor.u32 %v1457_v40, %v1231_v41  ;;  %v1421_v48 = vld [vmem:[#allocation8 + $0x84] sm:$0xf]  ;;  %v1087_v49 = vld [vmem:[#allocation8 + $0x90] sm:$0xf0]  ;;  %v1086_v50 = vor.u32 %v1423_v43, %v1085_v42 }
  0x29   :  { %604 = vmatpush.bf16.msrb.mxu1 %v1250_v34  ;;  %v1214_v51 = vor.u32 %v1455_v45, %v1213_v44  ;;  %v1453_v52 = vld [vmem:[#allocation8 + $0x184] sm:$0xf]  ;;  %v1215_v53 = vld [vmem:[#allocation8 + $0x190] sm:$0xf0]  ;;  %v1069_v54 = vld [vmem:[#allocation8 + $0x60] sm:$0xf]  ;;  %v1090_v58 = vor.u32 %v1421_v48, %v1087_v49 }
  0x2a   :  { %566 = vmatpush.bf16.msra.mxu2 %v1102_v38  ;;  %v1419_v55 = vld [vmem:[#allocation8 + $0x6c] sm:$0xf0]  ;;  %v1197_v56 = vld [vmem:[#allocation8 + $0x160] sm:$0xf]  ;;  %v1218_v59 = vor.u32 %v1453_v52, %v1215_v53  ;;  %v1417_v60 = vld [vmem:[#allocation8 + $0x64] sm:$0xf] }
  0x2b   :  { %579 = vmatpush.bf16.msra.mxu3 %v1230_v39  ;;  %v1451_v57 = vld [vmem:[#allocation8 + $0x16c] sm:$0xf0]  ;;  %v1071_v61 = vld [vmem:[#allocation8 + $0x70] sm:$0xf0]  ;;  %v1070_v62 = vor.u32 %v1419_v55, %v1069_v54  ;;  %v1449_v0 = vld [vmem:[#allocation8 + $0x164] sm:$0xf] }
  0x2c   :  { %592 = vmatpush.bf16.msrb.mxu0 %v1106_v46  ;;  %v1198_v63 = vor.u32 %v1451_v57, %v1197_v56  ;;  %v1199_v1 = vld [vmem:[#allocation8 + $0x170] sm:$0xf0]  ;;  %v1053_v2 = vld [vmem:[#allocation8 + $0x40] sm:$0xf]  ;;  %v1415_v3 = vld [vmem:[#allocation8 + $0x4c] sm:$0xf0]  ;;  %v1074_v6 = vor.u32 %v1417_v60, %v1071_v61 }
  0x2d   :  { %605 = vmatpush.bf16.msrb.mxu1 %v1234_v47  ;;  %v1181_v4 = vld [vmem:[#allocation8 + $0x140] sm:$0xf]  ;;  %v1447_v5 = vld [vmem:[#allocation8 + $0x14c] sm:$0xf0]  ;;  %v1202_v7 = vor.u32 %v1449_v0, %v1199_v1  ;;  %v1413_v8 = vld [vmem:[#allocation8 + $0x44] sm:$0xf]  ;;  %v1054_v10 = vor.u32 %v1415_v3, %v1053_v2 }
  0x2e   :  { %567 = vmatpush.bf16.msra.mxu2 %v1086_v50  ;;  %v1055_v9 = vld [vmem:[#allocation8 + $0x50] sm:$0xf0]  ;;  %v1182_v11 = vor.u32 %v1447_v5, %v1181_v4  ;;  %v1445_v12 = vld [vmem:[#allocation8 + $0x144] sm:$0xf]  ;;  %v1037_v14 = vld [vmem:[#allocation8 + $0x20] sm:$0xf] }
  0x2f   :  { %580 = vmatpush.bf16.msra.mxu3 %v1214_v51  ;;  %v1183_v13 = vld [vmem:[#allocation8 + $0x150] sm:$0xf0]  ;;  %v1411_v15 = vld [vmem:[#allocation8 + $0x2c] sm:$0xf0]  ;;  %v1165_v16 = vld [vmem:[#allocation8 + $0x120] sm:$0xf]  ;;  %v1058_v18 = vor.u32 %v1413_v8, %v1055_v9 }
  0x30   :  { %593 = vmatpush.bf16.msrb.mxu0 %v1090_v58  ;;  %v1443_v17 = vld [vmem:[#allocation8 + $0x12c] sm:$0xf0]  ;;  %v1409_v19 = vld [vmem:[#allocation8 + $0x24] sm:$0xf]  ;;  %v1186_v20 = vor.u32 %v1445_v12, %v1183_v13  ;;  %v1039_v21 = vld [vmem:[#allocation8 + $0x30] sm:$0xf0]  ;;  %v1038_v24 = vor.u32 %v1411_v15, %v1037_v14 }
  0x31   :  { %606 = vmatpush.bf16.msrb.mxu1 %v1218_v59  ;;  %v1441_v22 = vld [vmem:[#allocation8 + $0x124] sm:$0xf]  ;;  %v1167_v23 = vld [vmem:[#allocation8 + $0x130] sm:$0xf0]  ;;  %v1166_v25 = vor.u32 %v1443_v17, %v1165_v16  ;;  %v1021_v26 = vld [vmem:[#allocation8] sm:$0xf]  ;;  %v1042_v32 = vor.u32 %v1409_v19, %v1039_v21 }
  0x32   :  { %568 = vmatpush.bf16.msra.mxu2 %v1070_v62  ;;  %v1407_v27 = vld [vmem:[#allocation8 + $0xc] sm:$0xf0]  ;;  %v1149_v28 = vld [vmem:[#allocation8 + $0x100] sm:$0xf]  ;;  %v1405_v30 = vld [vmem:[#allocation8 + $0x4] sm:$0xf]  ;;  %v1170_v36 = vor.u32 %v1441_v22, %v1167_v23 }
  0x33   :  { %581 = vmatpush.bf16.msra.mxu3 %v1198_v63  ;;  %v1439_v29 = vld [vmem:[#allocation8 + $0x10c] sm:$0xf0]  ;;  %v1141_v31 = vld [vmem:[#allocation8 + $0xe8] sm:$0xf]  ;;  %v1436_v33 = vld [vmem:[#allocation8 + $0xf4] sm:$0xf0]  ;;  %v1022_v39 = vor.u32 %v1407_v27, %v1021_v26 }
  0x34   :  { %594 = vmatpush.bf16.msrb.mxu0 %v1074_v6  ;;  %v1269_v34 = vld [vmem:[#allocation8 + $0x1e8] sm:$0xf]  ;;  %v1468_v35 = vld [vmem:[#allocation8 + $0x1f4] sm:$0xf0]  ;;  %v1023_v37 = vld [vmem:[#allocation8 + $0x10] sm:$0xf0]  ;;  %v1150_v40 = vor.u32 %v1439_v29, %v1149_v28  ;;  %v1142_v44 = vor.u32 %v1436_v33, %v1141_v31 }
  0x35   :  { %607 = vmatpush.bf16.msrb.mxu1 %v1202_v7  ;;  %v1437_v38 = vld [vmem:[#allocation8 + $0x104] sm:$0xf]  ;;  %v1151_v41 = vld [vmem:[#allocation8 + $0x110] sm:$0xf0]  ;;  %v1434_v42 = vld [vmem:[#allocation8 + $0xec] sm:$0xf]  ;;  %v1270_v45 = vor.u32 %v1468_v35, %v1269_v34  ;;  %v1026_v49 = vor.u32 %v1405_v30, %v1023_v37 }
  0x36   :  { %569 = vmatpush.bf16.msra.mxu2 %v1054_v10  ;;  %v1143_v43 = vld [vmem:[#allocation8 + $0xf8] sm:$0xf0]  ;;  %v1466_v46 = vld [vmem:[#allocation8 + $0x1ec] sm:$0xf]  ;;  %v1125_v48 = vld [vmem:[#allocation8 + $0xc8] sm:$0xf]  ;;  %v1154_v53 = vor.u32 %v1437_v38, %v1151_v41 }
  0x37   :  { %582 = vmatpush.bf16.msra.mxu3 %v1182_v11  ;;  %v1271_v47 = vld [vmem:[#allocation8 + $0x1f8] sm:$0xf0]  ;;  %v1432_v50 = vld [vmem:[#allocation8 + $0xd4] sm:$0xf0]  ;;  %v1253_v51 = vld [vmem:[#allocation8 + $0x1c8] sm:$0xf]  ;;  %v1146_v54 = vor.u32 %v1434_v42, %v1143_v43 }
  0x38   :  { %595 = vmatpush.bf16.msrb.mxu0 %v1058_v18  ;;  %v1464_v52 = vld [vmem:[#allocation8 + $0x1d4] sm:$0xf0]  ;;  %v1274_v55 = vor.u32 %v1466_v46, %v1271_v47  ;;  %v1430_v56 = vld [vmem:[#allocation8 + $0xcc] sm:$0xf]  ;;  %v1127_v57 = vld [vmem:[#allocation8 + $0xd8] sm:$0xf0]  ;;  %v1126_v58 = vor.u32 %v1432_v50, %v1125_v48 }
  0x39   :  { %608 = vmatpush.bf16.msrb.mxu1 %v1186_v20  ;;  %v1254_v59 = vor.u32 %v1464_v52, %v1253_v51  ;;  %v1462_v60 = vld [vmem:[#allocation8 + $0x1cc] sm:$0xf]  ;;  %v1255_v61 = vld [vmem:[#allocation8 + $0x1d8] sm:$0xf0]  ;;  %v1130_v62 = vor.u32 %v1430_v56, %v1127_v57  ;;  %v1109_v0 = vld [vmem:[#allocation8 + $0xa8] sm:$0xf] }
  0x3a   :  { %570 = vmatpush.bf16.msra.mxu2 %v1038_v24  ;;  %v1258_v63 = vor.u32 %v1462_v60, %v1255_v61  ;;  %v1428_v1 = vld [vmem:[#allocation8 + $0xb4] sm:$0xf0]  ;;  %v1237_v2 = vld [vmem:[#allocation8 + $0x1a8] sm:$0xf]  ;;  %v1426_v5 = vld [vmem:[#allocation8 + $0xac] sm:$0xf] }
  0x3b   :  { %583 = vmatpush.bf16.msra.mxu3 %v1166_v25  ;;  %v1110_v3 = vor.u32 %v1428_v1, %v1109_v0  ;;  %v1460_v4 = vld [vmem:[#allocation8 + $0x1b4] sm:$0xf0]  ;;  %v1111_v6 = vld [vmem:[#allocation8 + $0xb8] sm:$0xf0]  ;;  %v1458_v9 = vld [vmem:[#allocation8 + $0x1ac] sm:$0xf] }
  0x3c   :  { %596 = vmatpush.bf16.msrb.mxu0 %v1042_v32  ;;  %v1238_v7 = vor.u32 %v1460_v4, %v1237_v2  ;;  %v1114_v8 = vor.u32 %v1426_v5, %v1111_v6  ;;  %v1239_v10 = vld [vmem:[#allocation8 + $0x1b8] sm:$0xf0]  ;;  %v1093_v12 = vld [vmem:[#allocation8 + $0x88] sm:$0xf]  ;;  %v1424_v13 = vld [vmem:[#allocation8 + $0x94] sm:$0xf0] }
  0x3d   :  { %609 = vmatpush.bf16.msrb.mxu1 %v1170_v36  ;;  %v1242_v11 = vor.u32 %v1458_v9, %v1239_v10  ;;  %v1221_v14 = vld [vmem:[#allocation8 + $0x188] sm:$0xf]  ;;  %v1094_v15 = vor.u32 %v1424_v13, %v1093_v12  ;;  %v1456_v16 = vld [vmem:[#allocation8 + $0x194] sm:$0xf0]  ;;  %v1422_v17 = vld [vmem:[#allocation8 + $0x8c] sm:$0xf] }
  0x3e   :  { %571 = vmatpush.bf16.msra.mxu2 %v1022_v39  ;;  %v1095_v18 = vld [vmem:[#allocation8 + $0x98] sm:$0xf0]  ;;  %v1222_v19 = vor.u32 %v1456_v16, %v1221_v14  ;;  %v1454_v21 = vld [vmem:[#allocation8 + $0x18c] sm:$0xf]  ;;  %v1077_v24 = vld [vmem:[#allocation8 + $0x68] sm:$0xf] }
  0x3f   :  { %584 = vmatpush.bf16.msra.mxu3 %v1150_v40  ;;  %v1098_v20 = vor.u32 %v1422_v17, %v1095_v18  ;;  %v1223_v22 = vld [vmem:[#allocation8 + $0x198] sm:$0xf0]  ;;  %v1420_v25 = vld [vmem:[#allocation8 + $0x74] sm:$0xf0]  ;;  %v1205_v26 = vld [vmem:[#allocation8 + $0x168] sm:$0xf] }
  0x40   :  { %597 = vmatpush.bf16.msrb.mxu0 %v1026_v49  ;;  %v1226_v23 = vor.u32 %v1454_v21, %v1223_v22  ;;  %v1078_v27 = vor.u32 %v1420_v25, %v1077_v24  ;;  %v1452_v28 = vld [vmem:[#allocation8 + $0x174] sm:$0xf0]  ;;  %v1418_v29 = vld [vmem:[#allocation8 + $0x6c] sm:$0xf]  ;;  %v1079_v30 = vld [vmem:[#allocation8 + $0x78] sm:$0xf0] }
  0x41   :  { %610 = vmatpush.bf16.msrb.mxu1 %v1154_v53  ;;  %v1206_v31 = vor.u32 %v1452_v28, %v1205_v26  ;;  %v1082_v32 = vor.u32 %v1418_v29, %v1079_v30  ;;  %v1450_v33 = vld [vmem:[#allocation8 + $0x16c] sm:$0xf]  ;;  %v1207_v34 = vld [vmem:[#allocation8 + $0x178] sm:$0xf0]  ;;  %v1061_v36 = vld [vmem:[#allocation8 + $0x48] sm:$0xf] }
  0x42   :  { %616 = vmatpush.bf16.msrb.mxu2 %v1142_v44  ;;  %v1210_v35 = vor.u32 %v1450_v33, %v1207_v34  ;;  %v1416_v37 = vld [vmem:[#allocation8 + $0x54] sm:$0xf0]  ;;  %v1189_v38 = vld [vmem:[#allocation8 + $0x148] sm:$0xf]  ;;  %v1414_v41 = vld [vmem:[#allocation8 + $0x4c] sm:$0xf] }
  0x43   :  { %629 = vmatpush.bf16.msrb.mxu3 %v1270_v45  ;;  %v1062_v39 = vor.u32 %v1416_v37, %v1061_v36  ;;  %v1448_v40 = vld [vmem:[#allocation8 + $0x154] sm:$0xf0]  ;;  %v1063_v42 = vld [vmem:[#allocation8 + $0x58] sm:$0xf0]  ;;  %v1446_v45 = vld [vmem:[#allocation8 + $0x14c] sm:$0xf] }
  0x44   :  { %642 = vmatpush.bf16.msra.mxu0 %v1146_v54  ;;  %v1190_v43 = vor.u32 %v1448_v40, %v1189_v38  ;;  %v1066_v44 = vor.u32 %v1414_v41, %v1063_v42  ;;  %v1191_v46 = vld [vmem:[#allocation8 + $0x158] sm:$0xf0]  ;;  %v1045_v47 = vld [vmem:[#allocation8 + $0x28] sm:$0xf]  ;;  %v1412_v49 = vld [vmem:[#allocation8 + $0x34] sm:$0xf0] }
  0x45   :  { %655 = vmatpush.bf16.msra.mxu1 %v1274_v55  ;;  %v1194_v48 = vor.u32 %v1446_v45, %v1191_v46  ;;  %v1173_v50 = vld [vmem:[#allocation8 + $0x128] sm:$0xf]  ;;  %v1444_v51 = vld [vmem:[#allocation8 + $0x134] sm:$0xf0]  ;;  %v1046_v52 = vor.u32 %v1412_v49, %v1045_v47  ;;  %v1410_v53 = vld [vmem:[#allocation8 + $0x2c] sm:$0xf] }
  0x46   :  { %617 = vmatpush.bf16.msrb.mxu2 %v1126_v58  ;;  %v1047_v54 = vld [vmem:[#allocation8 + $0x38] sm:$0xf0]  ;;  %v1442_v55 = vld [vmem:[#allocation8 + $0x12c] sm:$0xf]  ;;  %v1174_v56 = vor.u32 %v1444_v51, %v1173_v50  ;;  %v1408_v60 = vld [vmem:[#allocation8 + $0x14] sm:$0xf0] }
  0x47   :  { %630 = vmatpush.bf16.msrb.mxu3 %v1254_v59  ;;  %v1050_v57 = vor.u32 %v1410_v53, %v1047_v54  ;;  %v1175_v58 = vld [vmem:[#allocation8 + $0x138] sm:$0xf0]  ;;  %v1029_v59 = vld [vmem:[#allocation8 + $0x8] sm:$0xf]  ;;  %v1406_v0 = vld [vmem:[#allocation8 + $0xc] sm:$0xf] }
  0x48   :  { %643 = vmatpush.bf16.msra.mxu0 %v1130_v62  ;;  %v1178_v61 = vor.u32 %v1442_v55, %v1175_v58  ;;  %v1157_v62 = vld [vmem:[#allocation8 + $0x108] sm:$0xf]  ;;  %v1031_v1 = vld [vmem:[#allocation8 + $0x18] sm:$0xf0]  ;;  %v1438_v2 = vld [vmem:[#allocation8 + $0x10c] sm:$0xf]  ;;  %v1030_v4 = vor.u32 %v1408_v60, %v1029_v59 }
  0x49   :  { %656 = vmatpush.bf16.msra.mxu1 %v1258_v63  ;;  %v1440_v63 = vld [vmem:[#allocation8 + $0x114] sm:$0xf0]  ;;  %v1034_v6 = vor.u32 %v1406_v0, %v1031_v1  ;;  %v1484_v18 = vld [vmem:[#allocation11 + $0x78] sm:$0xff]  ;;  %v1474_v28 = vld [vmem:[#allocation11 + $0x28] sm:$0xff]  ;;  %s1705_s10 = smov [#allocation13]   ;;  %s996_s14 = sshll.u32 %s1779_s7, 4  ;;  %s997_s14 = int_to_ptr.hbm [resolvable:$true] %s996_s14 }
  0x4a   :  { %618 = vmatpush.bf16.msrb.mxu2 %v1110_v3  ;;  %v1159_v3 = vld [vmem:[#allocation8 + $0x118] sm:$0xf0]  ;;  %v1158_v5 = vor.u32 %v1440_v63, %v1157_v62  ;;  %v1483_v24 = vld [vmem:[#allocation11 + $0x70] sm:$0xff]  ;;  %v1481_v29 = vld [vmem:[#allocation11 + $0x60] sm:$0xff]  ;;  %s994_s11 = sshll.u32 %s1705_s10, 4  ;;  %s995_s11 = int_to_ptr.vmem [resolvable:$true] %s994_s11 }
  0x4b   :  { %631 = vmatpush.bf16.msrb.mxu3 %v1238_v7  ;;  %v1162_v7 = vor.u32 %v1438_v2, %v1159_v3  ;;  %v1500_v21 = vld [vmem:[#allocation11 + $0xf8] sm:$0xff]  ;;  %v1475_v25 = vld [vmem:[#allocation11 + $0x30] sm:$0xff]  ;;  %v1473_v30 = vld [vmem:[#allocation11 + $0x20] sm:$0xff] }
  0x4c   :  { %644 = vmatpush.bf16.msra.mxu0 %v1114_v8  ;;  %v120_v8 = vld [vmem:[#allocation7] sm:$0x3]  ;;  %v1499_v26 = vld [vmem:[#allocation11 + $0xf0] sm:$0xff]  ;;  %v1498_v36 = vld [vmem:[#allocation11 + $0xe8] sm:$0xff] }
  0x4d   :  { %657 = vmatpush.bf16.msra.mxu1 %v1242_v11  ;;  %v122_v9 = vperm.slane %v120_v8, 0  ;;  %v123_v10 = vperm.slane %v120_v8, 1  ;;  %v1472_v33 = vld [vmem:[#allocation11 + $0x18] sm:$0xff]  ;;  %v1471_v37 = vld [vmem:[#allocation11 + $0x10] sm:$0xff]  ;;  %v1497_v40 = vld [vmem:[#allocation11 + $0xe0] sm:$0xff] }
  0x4e   :  { %619 = vmatpush.bf16.msrb.mxu2 %v1094_v15  ;;  %v1492_v34 = vld [vmem:[#allocation11 + $0xb8] sm:$0xff]  ;;  %v1491_v38 = vld [vmem:[#allocation11 + $0xb0] sm:$0xff]  ;;  %v1470_v41 = vld [vmem:[#allocation11 + $0x8] sm:$0xff] }
  0x4f   :  { %632 = vmatpush.bf16.msrb.mxu3 %v1222_v19  ;;  %v1476_v19 = vld [vmem:[#allocation11 + $0x38] sm:$0xff]  ;;  %v1490_v42 = vld [vmem:[#allocation11 + $0xa8] sm:$0xff]  ;;  %v1489_v45 = vld [vmem:[#allocation11 + $0xa0] sm:$0xff] }
  0x50   :  { %645 = vmatpush.bf16.msra.mxu0 %v1098_v20  ;;  %v1495_v46 = vld [vmem:[#allocation11 + $0xd0] sm:$0xff]  ;;  %v1488_v47 = vld [vmem:[#allocation11 + $0x98] sm:$0xff]  ;;  %v1493_v50 = vld [vmem:[#allocation11 + $0xc0] sm:$0xff] }
  0x51   :  { %658 = vmatpush.bf16.msra.mxu1 %v1226_v23  ;;  %v1487_v49 = vld [vmem:[#allocation11 + $0x90] sm:$0xff]  ;;  %v1486_v51 = vld [vmem:[#allocation11 + $0x88] sm:$0xff]  ;;  %v1485_v53 = vld [vmem:[#allocation11 + $0x80] sm:$0xff] }
  0x52   :  { %620 = vmatpush.bf16.msrb.mxu2 %v1078_v27  ;;  %v1482_v27 = vld [vmem:[#allocation11 + $0x68] sm:$0xff] }
  0x53   :  { %633 = vmatpush.bf16.msrb.mxu3 %v1206_v31  ;;  %v1480_v31 = vld [vmem:[#allocation11 + $0x58] sm:$0xff] }
  0x54   :  { %646 = vmatpush.bf16.msra.mxu0 %v1082_v32  ;;  %v1479_v32 = vld [vmem:[#allocation11 + $0x50] sm:$0xff] }
  0x55   :  { %659 = vmatpush.bf16.msra.mxu1 %v1210_v35  ;;  %v1478_v35 = vld [vmem:[#allocation11 + $0x48] sm:$0xff] }
  0x56   :  { %621 = vmatpush.bf16.msrb.mxu2 %v1062_v39  ;;  %v1477_v39 = vld [vmem:[#allocation11 + $0x40] sm:$0xff] }
  0x57   :  { %634 = vmatpush.bf16.msrb.mxu3 %v1190_v43  ;;  %v1496_v43 = vld [vmem:[#allocation11 + $0xd8] sm:$0xff] }
  0x58   :  { %647 = vmatpush.bf16.msra.mxu0 %v1066_v44  ;;  %v1469_v44 = vld [vmem:[#allocation11] sm:$0xff] }
  0x59   :  { %660 = vmatpush.bf16.msra.mxu1 %v1194_v48  ;;  %v1494_v48 = vld [vmem:[#allocation11 + $0xc8] sm:$0xff] }
  0x5a   :  { %622 = vmatpush.bf16.msrb.mxu2 %v1046_v52  ;;  %v234_v52 = vld [vmem:[#allocation10] sm:$0xf] }
  0x5b   :  { %635 = vmatpush.bf16.msrb.mxu3 %v1174_v56  ;;  %v237_v54 = vperm.slane %v234_v52, 1  ;;  %v236_v59 = vperm.slane %v234_v52, 0 }
  0x5c   :  { %648 = vmatpush.bf16.msra.mxu0 %v1050_v57 }
  0x5d   :  { %661 = vmatpush.bf16.msra.mxu1 %v1178_v61 }
  0x5e   :  { %623 = vmatpush.bf16.msrb.mxu2 %v1030_v4 }
  0x5f   :  { %636 = vmatpush.bf16.msrb.mxu3 %v1158_v5 }
  0x60   :  { %649 = vmatpush.bf16.msra.mxu0 %v1034_v6  ;;  %v239_v6 = vperm.slane %v234_v52, 3 }
  0x61   :  { %662 = vmatpush.bf16.msra.mxu1 %v1162_v7 }
  0xa0   :  { %v149_v11 = vpop.f32.mrf.mxu0 }
  0xa1   :  { %v150_v12 = vadd.f32 %v149_v11, %v122_v9  ;;  %v162_v13 = vpop.f32.mrf.mxu1 }
  0xa2   :  { %v163_v14 = vadd.f32 %v162_v13, %v123_v10  ;;  %v238_v13 = vperm.slane %v234_v52, 2 }
  0xa3   :  { %v166_v15 = vmax.f32 %v150_v12, 0.0 }
  0xa4   :  { %v167_v16 = vmax.f32 %v163_v14, 0.0 }
  0xa5   :  { %v168_v17 = vpack.c.bf16 %v166_v15, %v166_v15 }
  0xa6   :  { %v169_v20 = vpack.c.bf16 %v167_v16, %v167_v16 }
  0xa7   :  { %572 = vmatmul.bf16.vlgmr.msra.gmra.mxu2 %v168_v17  ;;  %598 = vmatmul.bf16.vlgmr.msrb.gmra.mxu0 %v168_v17 }
  0xa8   :  { %585 = vmatmul.bf16.vlgmr.msra.gmra.mxu3 %v169_v20  ;;  %611 = vmatmul.bf16.vlgmr.msrb.gmra.mxu1 %v169_v20  ;;  %v151_v22 = vpop.f32.mrf.mxu0 }
  0xa9   :  { %v164_v23 = vpop.f32.mrf.mxu1  ;;  %949 = vmatpush.bf16.msra.mxu3 %v1484_v18  ;;  %936 = vmatpush.bf16.msra.mxu2 %v1476_v19 }
  0xaa   :  { %975 = vmatpush.bf16.msrb.mxu1 %v1500_v21  ;;  %962 = vmatpush.bf16.msrb.mxu0 %v1492_v34 }
  0xad   :  { %950 = vmatpush.bf16.msra.mxu3 %v1483_v24  ;;  %937 = vmatpush.bf16.msra.mxu2 %v1475_v25 }
  0xae   :  { %976 = vmatpush.bf16.msrb.mxu1 %v1499_v26  ;;  %963 = vmatpush.bf16.msrb.mxu0 %v1491_v38 }
  0xb1   :  { %951 = vmatpush.bf16.msra.mxu3 %v1482_v27  ;;  %938 = vmatpush.bf16.msra.mxu2 %v1474_v28  ;;  %v1514_v28 = vld [vmem:[%s1778_s6] ss:$0 sm:$0xff] }
  0xb2   :  { %977 = vmatpush.bf16.msrb.mxu1 %v1498_v36  ;;  %964 = vmatpush.bf16.msrb.mxu0 %v1490_v42 }
  0xb5   :  { %952 = vmatpush.bf16.msra.mxu3 %v1481_v29  ;;  %939 = vmatpush.bf16.msra.mxu2 %v1473_v30 }
  0xb6   :  { %978 = vmatpush.bf16.msrb.mxu1 %v1497_v40  ;;  %965 = vmatpush.bf16.msrb.mxu0 %v1489_v45 }
  0xb7   :  { %624 = vmatmul.bf16.vlgmr.msrb.gmra.mxu2 %v168_v17  ;;  %650 = vmatmul.bf16.vlgmr.msra.gmra.mxu0 %v168_v17 }
  0xb8   :  { %637 = vmatmul.bf16.vlgmr.msrb.gmra.mxu3 %v169_v20  ;;  %663 = vmatmul.bf16.vlgmr.msra.gmra.mxu1 %v169_v20 }
  0xb9   :  { %953 = vmatpush.bf16.msra.mxu3 %v1480_v31  ;;  %940 = vmatpush.bf16.msra.mxu2 %v1472_v33 }
  0xba   :  { %979 = vmatpush.bf16.msrb.mxu1 %v1496_v43  ;;  %966 = vmatpush.bf16.msrb.mxu0 %v1488_v47 }
  0xbd   :  { %954 = vmatpush.bf16.msra.mxu3 %v1479_v32  ;;  %941 = vmatpush.bf16.msra.mxu2 %v1471_v37 }
  0xbe   :  { %980 = vmatpush.bf16.msrb.mxu1 %v1495_v46  ;;  %967 = vmatpush.bf16.msrb.mxu0 %v1487_v49 }
  0xc1   :  { %955 = vmatpush.bf16.msra.mxu3 %v1478_v35  ;;  %942 = vmatpush.bf16.msra.mxu2 %v1470_v41 }
  0xc2   :  { %981 = vmatpush.bf16.msrb.mxu1 %v1494_v48  ;;  %968 = vmatpush.bf16.msrb.mxu0 %v1486_v51 }
  0xc5   :  { %956 = vmatpush.bf16.msra.mxu3 %v1477_v39  ;;  %943 = vmatpush.bf16.msra.mxu2 %v1469_v44 }
  0xc6   :  { %982 = vmatpush.bf16.msrb.mxu1 %v1493_v50  ;;  %969 = vmatpush.bf16.msrb.mxu0 %v1485_v53 }
 0x124   :  { %v599_v55 = vpop.f32.mrf.mxu0 }
 0x125   :  { %v600_v56 = vadd.f32 %v599_v55, %v237_v54  ;;  %v612_v57 = vpop.f32.mrf.mxu1 }
 0x127   :  { %v613_v58 = vadd.f32 %v612_v57, %v600_v56 }
 0x129   :  { %v669_v60 = vmax.f32 %v613_v58, 0.0 }
 0x12a   :  { %v573_v61 = vpop.f32.mrf.mxu2 }
 0x12b   :  { %v673_v62 = vpack.c.bf16 %v669_v60, %v669_v60  ;;  %v574_v63 = vadd.f32 %v573_v61, %v236_v59  ;;  %v586_v0 = vpop.f32.mrf.mxu3 }
 0x12c   :  { %v601_v1 = vpop.f32.mrf.mxu0 }
 0x12d   :  { %v587_v2 = vadd.f32 %v586_v0, %v574_v63  ;;  %v614_v3 = vpop.f32.mrf.mxu1  ;;  %957 = vmatmul.bf16.vlgmr.msra.gmra.mxu3 %v673_v62 }
 0x12f   :  { %v668_v4 = vmax.f32 %v587_v2, 0.0 }
 0x131   :  { %v672_v5 = vpack.c.bf16 %v668_v4, %v668_v4 }
 0x132   :  { %v575_v7 = vpop.f32.mrf.mxu2 }
 0x133   :  { %v588_v8 = vpop.f32.mrf.mxu3  ;;  %944 = vmatmul.bf16.vlgmr.msra.gmra.mxu2 %v672_v5 }
 0x134   :  { %v651_v9 = vpop.f32.mrf.mxu0 }
 0x135   :  { %v652_v10 = vadd.f32 %v651_v9, %v239_v6  ;;  %v664_v11 = vpop.f32.mrf.mxu1 }
 0x137   :  { %v665_v12 = vadd.f32 %v664_v11, %v652_v10 }
 0x139   :  { %v671_v14 = vmax.f32 %v665_v12, 0.0 }
 0x13a   :  { %v625_v15 = vpop.f32.mrf.mxu2 }
 0x13b   :  { %v675_v16 = vpack.c.bf16 %v671_v14, %v671_v14  ;;  %v626_v17 = vadd.f32 %v625_v15, %v238_v13  ;;  %v638_v18 = vpop.f32.mrf.mxu3 }
 0x13c   :  { %v653_v19 = vpop.f32.mrf.mxu0 }
 0x13d   :  { %v639_v20 = vadd.f32 %v638_v18, %v626_v17  ;;  %v666_v21 = vpop.f32.mrf.mxu1  ;;  %983 = vmatmul.bf16.vlgmr.msrb.gmra.mxu1 %v675_v16 }
 0x13f   :  { %v670_v22 = vmax.f32 %v639_v20, 0.0 }
 0x141   :  { %v674_v23 = vpack.c.bf16 %v670_v22, %v670_v22 }
 0x142   :  { %v627_v24 = vpop.f32.mrf.mxu2 }
 0x143   :  { %v640_v25 = vpop.f32.mrf.mxu3  ;;  %970 = vmatmul.bf16.vlgmr.msrb.gmra.mxu0 %v674_v23 }
 0x1b0   :  { %v958_v26 = vpop.f32.mrf.mxu3 }
 0x1b6   :  { %v945_v27 = vpop.f32.mrf.mxu2 }
 0x1b7   :  { %v946_v31 = vadd.f32 %v1514_v28, %v945_v27 }
 0x1b8   :  { %v960_v29 = vpop.f32.mrf.mxu3 }
 0x1b9   :  { %v959_v33 = vadd.f32 %v958_v26, %v946_v31 }
 0x1ba   :  { %v984_v30 = vpop.f32.mrf.mxu1 }
 0x1be   :  { %v947_v32 = vpop.f32.mrf.mxu2 }
 0x1c0   :  { %v971_v34 = vpop.f32.mrf.mxu0 }
 0x1c1   :  { %v972_v35 = vadd.f32 %v971_v34, %v959_v33 }
 0x1c2   :  { %v986_v36 = vpop.f32.mrf.mxu1 }
 0x1c3   :  { %v985_v37 = vadd.f32 %v984_v30, %v972_v35 }
 0x1c5   :  { %988 = vst [vmem:[#allocation13] sm:$0xff] %v985_v37 }
 0x1c6   :  { %999 = dma.vmem_to_hbm [thread:$0]  %s995_s11, 128, %s997_s14, [#allocation4]  }
 0x1c8   :  { %v973_v38 = vpop.f32.mrf.mxu0 }
 0x1c9   :  { %1691 = dma.done.wait [#allocation4], 128  }
 0x1ca   :  { %1692 = vsyncadd [#allocation4], 4294967168 }
 0x1cb   :  { %1004 = vsyncpa [#allocation3], 1 }
 0x1cc   :  { %1005 = vsyncpa [#allocation6], 1 }
 0x1cd   :  { %1006 = vsyncpa [#allocation9], 1 }
 0x1ce   :  { %1007 = vsyncpa [#allocation12], 1 }
 0x1cf   :  { %1008 = vsyncpa [#allocation4], 1 }

</bundles_post_ra>
